<compile_context>
chip_gen: v7x
topology: tpu7x:2x2x1
jax: 0.10.0
libtpu: 0.0.40
codegen_flags: <defaults>
</compile_context>

<pallas_src>
import functools

import jax
import jax.numpy as jnp
from jax.experimental import pallas as pl
from jax.experimental.pallas import tpu as pltpu

K = 3        # kernel size
S = 1        # stride
PAD = K // 2


def _pool_identity(dtype):
    """Identity element for max: -inf for floats, iinfo.min for integers."""
    dtype = jnp.dtype(dtype)
    if jnp.issubdtype(dtype, jnp.floating):
        return float("-inf")
    return int(jnp.iinfo(dtype).min)


def _choose_channel_tile(C, HW, itemsize, max_block_bytes=2 * 1024 * 1024):
    """Channel tile: a multiple of 8 (sublane constraint) that divides C, preferring
    >=2 tiles (feeds both v7x TensorCores at batch 1) and keeping each block small
    enough for comfortable double-buffering. Falls back to full C (always legal)."""
    cap = max(C // 2, 8)
    cap = min(cap, max(max_block_bytes // max(HW * itemsize, 1), 8))
    cap -= cap % 8
    cap = max(cap, 8)
    for t in range(cap, 7, -8):
        if C % t == 0:
            return t
    return C


def _sp_maxpool_kernel(col_ref, x_ref, o_ref, *, H, W):
    """3x3 / stride-1 / pad-1 max pool on a (TC, H*W) channel slab.

    The spatial plane is kept flattened on the lane axis, so the four window
    shifts are cheap XLU lane rolls; the virtual -inf border is applied by
    masking rolled values at the row / column edges. The 3x3 max is separable:
    a 1x3 max along W followed by a 3x1 max along H (4 maxima total, VPU).
    """
    HW = H * W
    x = x_ref[0]                                   # (TC, HW)
    tc = x.shape[0]
    neg = jnp.asarray(_pool_identity(x.dtype), x.dtype)

    # Precomputed column index (p % W) and in-kernel flat-position iota.
    col = jnp.broadcast_to(col_ref[...], (tc, HW))                    # int32
    pos = jax.lax.broadcasted_iota(jnp.int32, (tc, HW), 1)            # int32

    # ---- 1x3 max along W: lane rolls by +-1, mask at row edges ----
    left = pltpu.roll(x, shift=1, axis=1)          # left[p]  = x[p - 1]
    right = pltpu.roll(x, shift=HW - 1, axis=1)    # right[p] = x[p + 1]
    left = jnp.where(col > 0, left, neg)           # no left neighbor at col 0
    right = jnp.where(col < W - 1, right, neg)     # no right neighbor at col W-1
    row_max = jnp.maximum(x, jnp.maximum(left, right))

    # ---- 3x1 max along H: lane rolls by +-W, mask at top / bottom rows ----
    up = pltpu.roll(row_max, shift=W, axis=1)          # up[p]   = row_max[p - W]
    down = pltpu.roll(row_max, shift=HW - W, axis=1)   # down[p] = row_max[p + W]
    up = jnp.where(pos >= W, up, neg)                  # no row above row 0
    down = jnp.where(pos < (H - 1) * W, down, neg)     # no row below row H-1

    o_ref[0] = jnp.maximum(row_max, jnp.maximum(up, down))


def sp_forward(x):
    """MaxPool2d(kernel_size=3, stride=1, padding=1) on NCHW input via Pallas TPU."""
    N, C, H, W = x.shape
    HW = H * W

    # Free re-layout: merge the two innermost contiguous dims (no HBM traffic).
    x3 = x.reshape(N, C, HW)
    # Tiny per-position column index (p % W); read once per grid step.
    col_ids = (jnp.arange(HW, dtype=jnp.int32) % W).reshape(1, HW)

    tc = _choose_channel_tile(C, HW, jnp.dtype(x.dtype).itemsize)
    grid = (N, C // tc)

    kernel = functools.partial(_sp_maxpool_kernel, H=H, W=W)
    out3 = pl.pallas_call(
        kernel,
        out_shape=jax.ShapeDtypeStruct((N, C, HW), x.dtype),
        grid_spec=pltpu.PrefetchScalarGridSpec(
            num_scalar_prefetch=0,
            grid=grid,
            in_specs=[
                pl.BlockSpec((1, HW), lambda n, c: (0, 0)),         # col_ids (tiny)
                pl.BlockSpec((1, tc, HW), lambda n, c: (n, c, 0)),  # input slab
            ],
            out_specs=pl.BlockSpec((1, tc, HW), lambda n, c: (n, c, 0)),
        ),
        # Both axes independent -> megacore sharding on v7x even when N == 1.
        compiler_params=pltpu.CompilerParams(
            dimension_semantics=("parallel", "parallel")),
    )(col_ids, x3)

    return out3.reshape(N, C, H, W)


if __name__ == "__main__":
    key = jax.random.PRNGKey(0)
    x = jax.random.normal(key, (2, 4, 16, 16), dtype=jnp.float32)

    out = jax.block_until_ready(sp_forward(x))

    # Reference: reduce_window max with -inf padding (== PyTorch MaxPool2d(3,1,1)).
    ref = jax.lax.reduce_window(
        x, -jnp.inf, jax.lax.max,
        window_dimensions=(1, 1, K, K),
        window_strides=(1, 1, S, S),
        padding=((0, 0), (0, 0), (PAD, PAD), (PAD, PAD)),
    )
    assert out.shape == ref.shape
    assert jnp.array_equal(out, ref), "f32 mismatch vs reference max pool"

    # bf16 path: kernel stays bf16 end-to-end (max pooling commutes with rounding,
    # so the f32 reference cast to bf16 is bit-exact).
    xb = x.astype(jnp.bfloat16)
    outb = jax.block_until_ready(sp_forward(xb))
    refb = ref.astype(jnp.bfloat16)
    assert outb.dtype == jnp.bfloat16
    assert jnp.array_equal(outb, refb), "bf16 mismatch vs reference max pool"

    print("KERNEL_OK")
</pallas_src>

<mosaic_0001>
module attributes {stable_mosaic.version = 11 : i64} {
  func.func @_sp_maxpool_kernel(%arg0: i32, %arg1: i32, %arg2: memref<1x256xi32, #tpu.memory_space<vmem>>, %arg3: memref<1x4x256xf32, #tpu.memory_space<vmem>>, %arg4: memref<1x4x256xf32, #tpu.memory_space<vmem>>) attributes {dimension_semantics = [#tpu.dimension_semantics<parallel>, #tpu.dimension_semantics<parallel>], iteration_bounds = array<i64: 2, 1>, scalar_prefetch = 0 : i64, scratch_operands = 0 : i64, tpu.core_type = #tpu.core_type<tc>, window_params = [{pipeline_mode = #tpu.pipeline_mode<synchronous>, transform_indices = @transform_0, window_bounds = array<i64: 1, 256>}, {transform_indices = @transform_1, window_bounds = array<i64: 1, 4, 256>}, {transform_indices = @transform_2, window_bounds = array<i64: 1, 4, 256>}]} {
    %c0 = arith.constant 0 : index
    %c0_0 = arith.constant 0 : index
    %c0_1 = arith.constant 0 : index
    %0 = vector.load %arg3[%c0, %c0_0, %c0_1] : memref<1x4x256xf32, #tpu.memory_space<vmem>>, vector<1x4x256xf32>
    %1 = vector.shape_cast %0 : vector<1x4x256xf32> to vector<4x256xf32>
    %c0_2 = arith.constant 0 : index
    %c0_3 = arith.constant 0 : index
    %2 = vector.load %arg2[%c0_2, %c0_3] : memref<1x256xi32, #tpu.memory_space<vmem>>, vector<1x256xi32>
    %3 = vector.shape_cast %2 : vector<1x256xi32> to vector<1x256xi32>
    %4 = vector.broadcast %3 : vector<1x256xi32> to vector<4x256xi32>
    %5 = tpu.iota {dimensions = array<i32: 1>} : vector<4x256xi32>
    %c1_i32 = arith.constant 1 : i32
    %6 = tpu.dynamic_rotate %1 by %c1_i32 dim 1 : vector<4x256xf32>, i32 -> vector<4x256xf32>
    %c255_i32 = arith.constant 255 : i32
    %7 = tpu.dynamic_rotate %1 by %c255_i32 dim 1 : vector<4x256xf32>, i32 -> vector<4x256xf32>
    %c0_i32 = arith.constant 0 : i32
    %8 = vector.broadcast %c0_i32 : i32 to vector<4x256xi32>
    %9 = arith.cmpi sgt, %4, %8 : vector<4x256xi32>
    %cst = arith.constant 0xFF800000 : f32
    %10 = vector.broadcast %cst : f32 to vector<4x256xf32>
    %11 = arith.select %9, %6, %10 : vector<4x256xi1>, vector<4x256xf32>
    %c15_i32 = arith.constant 15 : i32
    %12 = vector.broadcast %c15_i32 : i32 to vector<4x256xi32>
    %13 = arith.cmpi slt, %4, %12 : vector<4x256xi32>
    %cst_4 = arith.constant 0xFF800000 : f32
    %14 = vector.broadcast %cst_4 : f32 to vector<4x256xf32>
    %15 = arith.select %13, %7, %14 : vector<4x256xi1>, vector<4x256xf32>
    %16 = arith.maximumf %11, %15 : vector<4x256xf32>
    %17 = arith.maximumf %1, %16 : vector<4x256xf32>
    %c16_i32 = arith.constant 16 : i32
    %18 = tpu.dynamic_rotate %17 by %c16_i32 dim 1 : vector<4x256xf32>, i32 -> vector<4x256xf32>
    %c240_i32 = arith.constant 240 : i32
    %19 = tpu.dynamic_rotate %17 by %c240_i32 dim 1 : vector<4x256xf32>, i32 -> vector<4x256xf32>
    %c16_i32_5 = arith.constant 16 : i32
    %20 = vector.broadcast %c16_i32_5 : i32 to vector<4x256xi32>
    %21 = arith.cmpi sge, %5, %20 : vector<4x256xi32>
    %cst_6 = arith.constant 0xFF800000 : f32
    %22 = vector.broadcast %cst_6 : f32 to vector<4x256xf32>
    %23 = arith.select %21, %18, %22 : vector<4x256xi1>, vector<4x256xf32>
    %c240_i32_7 = arith.constant 240 : i32
    %24 = vector.broadcast %c240_i32_7 : i32 to vector<4x256xi32>
    %25 = arith.cmpi slt, %5, %24 : vector<4x256xi32>
    %cst_8 = arith.constant 0xFF800000 : f32
    %26 = vector.broadcast %cst_8 : f32 to vector<4x256xf32>
    %27 = arith.select %25, %19, %26 : vector<4x256xi1>, vector<4x256xf32>
    %28 = arith.maximumf %23, %27 : vector<4x256xf32>
    %29 = arith.maximumf %17, %28 : vector<4x256xf32>
    %c0_9 = arith.constant 0 : index
    %c0_10 = arith.constant 0 : index
    %c0_11 = arith.constant 0 : index
    %30 = vector.load %arg4[%c0_9, %c0_10, %c0_11] : memref<1x4x256xf32, #tpu.memory_space<vmem>>, vector<1x4x256xf32>
    %31 = vector.shape_cast %30 : vector<1x4x256xf32> to vector<4x256xf32>
    %32 = vector.shape_cast %29 : vector<4x256xf32> to vector<1x4x256xf32>
    tpu.vector_store %arg4[%c0_9, %c0_10, %c0_11], %32 {strides = array<i32>} : memref<1x4x256xf32, #tpu.memory_space<vmem>>, vector<1x4x256xf32>,
    return
  }
  func.func @transform_0(%arg0: i32, %arg1: i32) -> (i32, i32) {
    %c0_i32 = arith.constant 0 : i32
    %c0_i32_0 = arith.constant 0 : i32
    %c0_i32_1 = arith.constant 0 : i32
    return %c0_i32, %c0_i32_0 : i32, i32
  }
  func.func @transform_1(%arg0: i32, %arg1: i32) -> (i32, i32, i32) {
    %c0_i32 = arith.constant 0 : i32
    %c0_i32_0 = arith.constant 0 : i32
    return %arg0, %arg1, %c0_i32 : i32, i32, i32
  }
  func.func @transform_2(%arg0: i32, %arg1: i32) -> (i32, i32, i32) {
    %c0_i32 = arith.constant 0 : i32
    %c0_i32_0 = arith.constant 0 : i32
    return %arg0, %arg1, %c0_i32 : i32, i32, i32
  }
}

</mosaic_0001>

<bundles_post_ra>
// kernel: tpu_custom_call.1
= control target key start
LH: loop header
LB: loop body
LE: loop exit
PB: predicated region body
PF: predicated region fallthrough
CT: control target
= control target key end

     0   :  { %7 = vsyncpa [#allocation3], 0  ;;  %s867_s0 = inlined_call_operand.hbm [shape: s32[1,256], index: 0, kind: input, shape index: {}]   ;;  %s868_s1 = inlined_call_operand.hbm [shape: f32[2,4,256], index: 1, kind: input, shape index: {}]   ;;  %s869_s2 = inlined_call_operand.hbm [shape: f32[2,4,256], index: 2, kind: output, shape index: {}]  }
   0x1   :  { %8 = vsyncpa [#allocation6], 0 }
   0x2   :  { %10 = vsyncpa [#allocation6 + $0x1], 0 }
   0x3   :  { %11 = vsyncpa [#allocation4], 0 }
   0x4   :  { %13 = vsyncpa [#allocation4 + $0x1], 0  ;;  %s647_s9 = smov 0   ;;  %s649_s10 = smov 0  }
   0x5   :  { %s651_s11 = smov 0   ;;  %s653_s12 = smov 0  }
   0x6   :  { %s655_s13 = smov 0   ;;  %s657_s14 = smov 0  }
   0x7 LB: > { %s382_s15 = sadd.s32 4294967295, %s623_s14   ;;  %s383_s16 = sadd.s32 4294967294, %s623_s14   ;;  %s623_s14 = sphi %s657_s14, %s19_s14   ;;  %s619_s13 = sphi %s655_s13, %s894_s13   ;;  %s615_s12 = sphi %s653_s12, %s893_s12   ;;  %s611_s11 = sphi %s651_s11, %s892_s11   ;;  %s607_s10 = sphi %s649_s10, %s891_s10   ;;  %s603_s9 = sphi %s647_s9, %s890_s9  }
   0x8   : > { %p74_p0 = scmp.ne.s32.totalorder %s607_s10, %s603_s9  ;;  %p681_p1 = scmp.eq.s32.totalorder %s382_s15, 0 }
   0x9   : > { %p685_p2 = scmp.eq.s32.totalorder %s382_s15, 1  ;;  %p106_p3 = scmp.eq.s32.totalorder %s383_s16, 1 }
   0xa   : > { %s874_s17 = scalar_select %p681_p1, 1, 0 }
   0xb   : > { %s875_s18 = scalar_select %p685_p2, 1, 0 }
   0xc   : > { %p691_p4 = por %p681_p1, %p74_p0  ;;  %p384_p5 = scmp.ge.s32.totalorder %s623_s14, 1 }
   0xd   : > { %p696_p6 = por %p106_p3, %p74_p0  ;;  %p113_p7 = scmp.lt.s32.totalorder %s623_s14, 3 }
   0xe   : > { %s876_s19 = scalar_select %p691_p4, 1, 0 }
   0xf   : > { %s877_s20 = scalar_select %p696_p6, 1, 0 }
  0x10   : > { %p701_p8 = pnand %p384_p5, %p113_p7  ;;  %s625_s22 = smov [#allocation2]  }
  0x11   : > { %s126_s23 = sshll.u32 %s625_s22, 4  ;;  %s31_s25 = sadd.s32 1, %s619_s13  ;;  %s127_s23 = int_to_ptr.vmem [resolvable:$true] %s126_s23 }
  0x12   : > { %s878_s21 = scalar_select %p701_p8, 1, 0 }
  0x13   : > { %p409_p10 = pneg %p701_p8  ;;  %s61_s26 = sadd.s32 1, %s611_s11 }
  0x14   : > { %p716_p12 = scmp.ge.s32.totalorder %s31_s25, 2  ;;  %s479_s30 = scalar_lea.hbm %s867_s0, 32 }
  0x15   : > { %p710_p11 = pnand %p409_p10, %p681_p1  ;;  %p480_p13 = scmp.ne.s32.totalorder %s867_s0, %s479_s30 }
  0x16   : > { %s880_s27 = scalar_select %p716_p12, 1, 0 }
  0x17   : > { %p481_p0 = pneg %p710_p11  ;;  %p486_p7 = scmp.lt.u32.totalorder %s479_s30, %s867_s0 }
  0x19   : > { %p482_p3 = pnand %p481_p0, %p480_p13 }
  0x1b   : > { %p483_p5 = pneg %p482_p3 }
  0x1d   : > { %p488_p10 = pnand %p486_p7, %p483_p5 }
  0x1f   : > { %491 = shalt.err (!%p488_p10)
}
  0x20   : > { %s492_s7 = scalar_lea.vmem %s127_s23, 32  ;;  %p500_p1 = scmp.lt.s32.totalorder %s127_s23, %s127_s23 }
  0x21   : > { %p493_p9 = scmp.ne.s32.totalorder %s127_s23, %s492_s7  ;;  %p501_p8 = scmp.lt.s32.totalorder %s492_s7, %s492_s7 }
  0x23   : > { %p495_p6 = pnand %p493_p9, %p481_p0  ;;  %p502_p2 = por %p501_p8, %p500_p1 }
  0x25   : > { %p496_p4 = pneg %p495_p6 }
  0x27   : > { %p503_p12 = pnand %p502_p2, %p496_p4 }
  0x29   : > { %506 = shalt.err (!%p503_p12)
}
  0x2a   : > { %412 = dma.hbm_to_vmem [thread:$0]  (!%p710_p11), %s867_s0, 32, %s127_s23, [#allocation3]  }
  0x2b   : > { %p881_p1 = scmp.ne.s32.totalorder %s880_s27, 0  ;;  %p68_p2 = scmp.ne.s32.totalorder %s611_s11, %s607_s10 }
  0x2c   : > { %p69_p4 = scmp.eq.s32.totalorder %s623_s14, 0  ;;  %p422_p6 = scmp.lt.s32.totalorder %s623_s14, 2 }
  0x2d   : > { %s896_s25 = smov (%p881_p1, %s31_s25), 0  ;;  %p882_p12 = scmp.ne.s32.totalorder %s875_s18, 0 }
  0x2e   : > { %s56_s16 = ssub.s32 %s619_s13, %s896_s25  ;;  %p70_p9 = por %p69_p4, %p68_p2 }
  0x2f   : > { %p59_p8 = scmp.eq.s32.totalorder %s56_s16, 0  ;;  %p748_p13 = por %p882_p12, %p68_p2 }
  0x30   : > { %s137_s24 = sand.u32 1, %s611_s11   ;;  %s399_s27 = sshll.u32 %s619_s13, 7 }
  0x31   : > { %s756_s28 = scalar_select %p59_p8, %s611_s11, %s61_s26  }
  0x32   : > { %s387_s23 = sshll.u32 %s137_s24, 3  ;;  %s762_s3 = scalar_lea.hbm %s868_s1, %s399_s27 }
  0x33   : > { %s141_s18 = scalar_lea.vmem [#allocation5], %s387_s23  ;;  %p766_p11 = pnand %p422_p6, %p70_p9 }
  0x34   : > { %s151_s4 = sshll.u32 %s141_s18, 4  ;;  %s138_s26 = scalar_lea.sflag [#allocation6], %s137_s24  ;;  %s764_s4 = int_to_ptr.vmem [resolvable:$true] %s151_s4 }
  0x35   : > { %s507_s6 = scalar_lea.hbm %s762_s3, 128  ;;  %p509_p3 = pneg %p766_p11 }
  0x36   : > { %p508_p0 = scmp.ne.s32.totalorder %s762_s3, %s507_s6  ;;  %s512_s15 = scalar_lea.hbm %s868_s1, 256 }
  0x37   : > { %p513_p10 = scmp.lt.u32.totalorder %s762_s3, %s868_s1  ;;  %p514_p1 = scmp.lt.u32.totalorder %s512_s15, %s507_s6 }
  0x38   : > { %p510_p5 = pnand %p509_p3, %p508_p0  ;;  %p516_p4 = scmp.lt.u32.totalorder %s507_s6, %s762_s3 }
  0x39   : > { %p515_p2 = por %p514_p1, %p513_p10 }
  0x3a   : > { %p511_p7 = pneg %p510_p5 }
  0x3b   : > { %p517_p6 = por %p516_p4, %p515_p2 }
  0x3d   : > { %p518_p8 = pnand %p517_p6, %p511_p7 }
  0x3f   : > { %521 = shalt.err (!%p518_p8)
}
  0x40   : > { %s522_s24 = scalar_lea.vmem %s764_s4, 128  ;;  %s626_s27 = smov [#allocation5]  }
  0x41   : > { %p523_p9 = scmp.ne.s32.totalorder %s764_s4, %s522_s24  ;;  %s527_s29 = sshll.u32 %s626_s27, 4  ;;  %s528_s29 = int_to_ptr.vmem [resolvable:$false] %s527_s29 }
  0x42   : > { %s529_s30 = scalar_lea.vmem %s528_s29, 256  ;;  %p530_p5 = scmp.lt.s32.totalorder %s764_s4, %s528_s29 }
  0x43   : > { %p525_p12 = pnand %p523_p9, %p509_p3  ;;  %p531_p10 = scmp.lt.s32.totalorder %s529_s30, %s522_s24 }
  0x45   : > { %p526_p0 = pneg %p525_p12  ;;  %p532_p1 = por %p531_p10, %p530_p5 }
  0x47   : > { %p533_p2 = pnand %p532_p1, %p526_p0 }
  0x49   : > { %536 = shalt.err (!%p533_p2)
}
  0x4a   : > { %416 = dma.hbm_to_vmem [thread:$0]  (!%p766_p11), %s762_s3, 128, %s764_s4, %s138_s26  }
  0x4b   : > { %p885_p7 = scmp.ne.s32.totalorder %s878_s21, 0 }
  0x4c   : > { %p886_p3 = scmp.ne.s32.totalorder (!%p885_p7), %s874_s17, 0 }
  0x4d   : > { %160 = sbr.rel (%p885_p7) target bundleno = 360 (0x168), region = 28 }
  0x54   : > { %590 = dma.done.wait (%p886_p3), [#allocation3], 32  }
  0x55   : > { %592 = vsyncadd (%p886_p3), [#allocation3], 4294967264  ;;  %s802_s18 = sand.u32 1, %s607_s10   ;;  %p887_p11 = scmp.ne.s32.totalorder %s876_s19, 0 }
  0x56   : > { %s392_s5 = sshll.u32 %s802_s18, 3  ;;  %s167_s6 = scalar_lea.sflag [#allocation6], %s802_s18 }
  0x57   : > { %s170_s3 = scalar_lea.vmem [#allocation5], %s392_s5 }
  0x58   : > { %594 = dma.done.wait (%p887_p11), %s167_s6, 128  }
  0x59   : > { %596 = vsyncadd (%p887_p11), %s167_s6, 4294967168  ;;  %v191_v0 = vld [vmem:[%s170_s3] sm:$0xff]  ;;  %s627_s21 = smov 127   ;;  %s628_s17 = smov 1   ;;  %v193_v2 = vlaneseq  ;;  %v192_v6 = vld [vmem:[#allocation2] sm:$0x3] }
  0x5a   : > { %214 = vrot.lane.b32.xlu1 %v191_v0, %s627_s21  ;;  %207 = vrot.lane.b32.xlu0 %v191_v0, %s628_s17  ;;  %v205_v1 = vcombine.high %v191_v0, %v191_v0  ;;  %s629_s19 = smov 16   ;;  %s630_s4 = smov 112  }
  0x5b   : > { %v194_v3 = vshrl.u32 %v193_v2, 7  ;;  %v202_v7 = vand.u32 127, %v193_v2  ;;  %s400_s26 = sshll.u32 %s615_s12, 7  ;;  %s190_s7 = scalar_lea.vmem [#allocation7], %s392_s5 }
  0x5c   : > { %s286_s8 = sshll.u32 %s190_s7, 4  ;;  %s818_s23 = scalar_lea.hbm %s869_s2, %s400_s26  ;;  %s820_s8 = int_to_ptr.vmem [resolvable:$true] %s286_s8 }
  0x5d   : > { %v195_v4 = vsub.s32 0, %v194_v3  ;;  %v199_v5 = vsub.s32 1, %v194_v3  ;;  %vm218_vm0 = vcmp.lt.s32.totalorder %v202_v7, 127  ;;  %vm211_vm1 = vcmp.lt.s32.totalorder %v202_v7, 1  ;;  %s270_s24 = scalar_lea.sflag [#allocation4], %s802_s18  ;;  %s537_s27 = scalar_lea.vmem %s820_s8, 128 }
  0x5e   : > { %216 = vrot.lane.b32.xlu1 %v205_v1, %s627_s21  ;;  %209 = vrot.lane.b32.xlu0 %v205_v1, %s628_s17  ;;  %vm243_vm6 = vcmp.lt.s32.totalorder %v202_v7, 16  ;;  %v203_v28 = vadd.s32 128, %v202_v7  ;;  %vm253_vm7 = vcmp.ge.s32.totalorder %v202_v7, 16  ;;  %vm250_vm8 = vcmp.lt.s32.totalorder %v202_v7, 112  ;;  %p538_p4 = scmp.ne.s32.totalorder %s820_s8, %s537_s27  ;;  %s631_s12 = smov [#allocation7]  }
  0x5f   : > { %v196_v8 = vrot.slane %v192_v6, %v195_v4  ;;  %v200_v9 = vrot.slane %v192_v6, %v199_v5  ;;  %s541_s29 = sshll.u32 %s631_s12, 4  ;;  %s542_s29 = int_to_ptr.vmem [resolvable:$false] %s541_s29 }
  0x60   : > { %vm258_vm9 = vcmp.lt.s32.totalorder %v203_v28, 240  ;;  %p539_p6 = pnand %p538_p4, %p748_p13  ;;  %s543_s30 = scalar_lea.vmem %s542_s29, 256 }
  0x61   : > { %vm225_vm2 = vcmp.lt.s32.totalorder %v196_v8, 15  ;;  %vm226_vm3 = vcmp.lt.s32.totalorder %v200_v9, 15  ;;  %vm221_vm4 = vcmp.gt.s32.totalorder %v196_v8, 0  ;;  %vm222_vm5 = vcmp.gt.s32.totalorder %v200_v9, 0  ;;  %p544_p9 = scmp.lt.s32.totalorder %s820_s8, %s542_s29  ;;  %p545_p12 = scmp.lt.s32.totalorder %s543_s30, %s537_s27 }
  0x62   : > { %p540_p8 = pneg %p539_p6 }
  0x63   : > { %p546_p0 = por %p545_p12, %p544_p9 }
  0x65   : > { %p547_p5 = pnand %p546_p0, %p540_p8 }
  0xcc   : > { %v215_v10 = vpop.permute.xlu1 %214  ;;  %v208_v11 = vpop.permute.xlu0 %207 }
  0xd0   : > { %v217_v12 = vpop.permute.xlu1 %216  ;;  %v210_v13 = vpop.permute.xlu0 %209 }
  0xd1   : > { %v219_v14 = vsel %vm218_vm0, %v215_v10, %v217_v12  ;;  %v220_v15 = vsel %vm218_vm0, %v217_v12, %v215_v10  ;;  %v212_v16 = vsel %vm211_vm1, %v208_v11, %v210_v13  ;;  %v213_v17 = vsel %vm211_vm1, %v210_v13, %v208_v11 }
  0xd2   : > { %v227_v18 = vsel %vm225_vm2, %v219_v14, -inf  ;;  %v228_v19 = vsel %vm226_vm3, %v220_v15, -inf  ;;  %v223_v20 = vsel %vm221_vm4, %v213_v17, -inf  ;;  %v224_v21 = vsel %vm222_vm5, %v212_v16, -inf }
  0xd3   : > { %v229_v22 = vmax.f32 %v223_v20, %v227_v18  ;;  %v230_v23 = vmax.f32 %v224_v21, %v228_v19 }
  0xd5   : > { %v233_v24 = vcombine.low %v229_v22, %v230_v23 }
  0xd7   : > { %v235_v25 = vmax.f32 %v191_v0, %v233_v24 }
  0xd9   : > { %239 = vrot.lane.b32.xlu0 %v235_v25, %s629_s19  ;;  %v237_v26 = vcombine.high %v235_v25, %v235_v25 }
  0xdb   : > { %241 = vrot.lane.b32.xlu1 %v237_v26, %s629_s19 }
  0xdd   : > { %246 = vrot.lane.b32.xlu0 %v235_v25, %s630_s4 }
  0xdf   : > { %248 = vrot.lane.b32.xlu1 %v237_v26, %s630_s4 }
 0x14b   : > { %v240_v27 = vpop.permute.xlu0 %239 }
 0x14d   : > { %v242_v29 = vpop.permute.xlu1 %241 }
 0x14e   : > { %v245_v30 = vsel %vm243_vm6, %v242_v29, %v240_v27  ;;  %v244_v36 = vsel %vm243_vm6, %v240_v27, %v242_v29 }
 0x14f   : > { %v247_v31 = vpop.permute.xlu0 %246  ;;  %v255_v33 = vsel %vm253_vm7, %v245_v30, -inf }
 0x151   : > { %v249_v32 = vpop.permute.xlu1 %248 }
 0x152   : > { %v251_v34 = vsel %vm250_vm8, %v247_v31, %v249_v32  ;;  %v252_v35 = vsel %vm250_vm8, %v249_v32, %v247_v31 }
 0x153   : > { %v260_v37 = vsel %vm258_vm9, %v252_v35, -inf  ;;  %v261_v38 = vmax.f32 %v255_v33, %v251_v34 }
 0x154   : > { %v262_v39 = vmax.f32 %v244_v36, %v260_v37 }
 0x156   : > { %v265_v40 = vcombine.low %v261_v38, %v262_v39 }
 0x158   : > { %v267_v41 = vmax.f32 %v235_v25, %v265_v40 }
 0x15a   : > { %268 = vst [vmem:[%s190_s7] sm:$0xff] %v267_v41 }
 0x15b   : > { %550 = shalt.err (!%p547_p5)
}
 0x15c   : > { %s551_s18 = scalar_lea.hbm %s818_s23, 128  ;;  %s555_s3 = scalar_lea.hbm %s869_s2, 256 }
 0x15d   : > { %p552_p10 = scmp.ne.s32.totalorder %s818_s23, %s551_s18  ;;  %p556_p7 = scmp.lt.u32.totalorder %s818_s23, %s869_s2 }
 0x15e   : > { %p557_p3 = scmp.lt.u32.totalorder %s555_s3, %s551_s18  ;;  %p559_p4 = scmp.lt.u32.totalorder %s551_s18, %s818_s23 }
 0x15f   : > { %p553_p1 = pnand %p552_p10, %p748_p13 }
 0x160   : > { %p558_p11 = por %p557_p3, %p556_p7 }
 0x161   : > { %p554_p2 = pneg %p553_p1 }
 0x162   : > { %p560_p6 = por %p559_p4, %p558_p11 }
 0x164   : > { %p561_p8 = pnand %p560_p6, %p554_p2 }
 0x166   : > { %564 = shalt.err (!%p561_p8)
}
 0x167   : > { %407 = dma.vmem_to_hbm [thread:$0]  (%p748_p13), %s820_s8, 128, %s818_s23, %s270_s24  }
 0x168 PF: > { %s298_s19 = sand.u32 1, %s603_s9   ;;  %p888_p9 = scmp.ne.s32.totalorder %s877_s20, 0 }
 0x169   : > { %p889_p12 = scmp.ge.s32.totalorder %s623_s14, 2  ;;  %s299_s4 = scalar_lea.sflag [#allocation4], %s298_s19 }
 0x16b   : > { %p418_p0 = pnand %p889_p12, %p888_p9 }
 0x16d   : > { %598 = dma.done.wait (!%p418_p0), %s299_s4, 128  }
 0x16e   : > { %600 = vsyncadd (!%p418_p0), %s299_s4, 4294967168  ;;  %s19_s14 = sadd.s32 1, %s623_s14   ;;  %s890_s9 = smov %s607_s10 }
 0x16f   : > { %p16_p5 = scmp.ge.s32.totalorder %s19_s14, 4   ;;  %s891_s10 = smov %s611_s11 }
 0x170   : > { %s892_s11 = smov %s756_s28  ;;  %s893_s12 = smov %s619_s13 }
 0x171   : > { %s894_s13 = smov %s896_s25  ;;  %18 = sbr.rel (!%p16_p5) target bundleno = 7 (0x7), region = 78 }
 0x178   :  { %304 = vsyncpa [#allocation3], 1 }
 0x179   :  { %306 = vsyncpa [#allocation3 + $0x1], 1 }
 0x17a   :  { %307 = vsyncpa [#allocation6], 1 }
 0x17b   :  { %309 = vsyncpa [#allocation6 + $0x1], 1 }
 0x17c   :  { %310 = vsyncpa [#allocation4], 1 }
 0x17d   :  { %312 = vsyncpa [#allocation4 + $0x1], 1 }

</bundles_post_ra>
